<compile_context>
chip_gen: v7x
topology: tpu7x:2x2x1
jax: 0.10.0
libtpu: 0.0.40
codegen_flags: <defaults>
</compile_context>

<pallas_src>
import functools

import jax
import jax.numpy as jnp
from jax.experimental import pallas as pl
from jax.experimental.pallas import tpu as pltpu

EPSILON = -100000.0  # masked_fill value (set, not add), matches the PyTorch buffer


def _round_up(x, m):
    return ((x + m - 1) // m) * m


def _const_slab_layout(d_model, n_times_h):
    """Row offsets (sublane-aligned) + padded shape of the packed constant slab."""
    E, NH = d_model, n_times_h
    r_wqkv = 0                                  # (E, 3NH)
    r_bqkv = _round_up(r_wqkv + E, 8)           # (1, 3NH)
    r_wo = _round_up(r_bqkv + 1, 8)             # (NH, E)
    r_bo = _round_up(r_wo + NH, 8)              # (1, E)
    rows = _round_up(r_bo + 1, 8)
    lanes = _round_up(max(3 * NH, E), 128)
    return r_wqkv, r_bqkv, r_wo, r_bo, rows, lanes


def _attention_kernel(x_ref, consts_ref, o_ref, *,
                      batch, seq, n_heads, d_head, d_model):
    B, S, N, H, E = batch, seq, n_heads, d_head, d_model
    NH = N * H
    sm_scale = 1.0 / (H ** 0.5)
    r_wqkv, r_bqkv, r_wo, r_bo, _, _ = _const_slab_layout(E, NH)

    # ---- Unpack the constant slab (static, sublane-aligned slices). ----
    w_qkv = consts_ref[r_wqkv:r_wqkv + E, 0:3 * NH]     # (E, 3NH)
    b_qkv = consts_ref[r_bqkv:r_bqkv + 1, 0:3 * NH]     # (1, 3NH)
    w_o = consts_ref[r_wo:r_wo + NH, 0:E]               # (NH, E)
    b_o = consts_ref[r_bo:r_bo + 1, 0:E]                # (1, E)

    # ---- Fused QKV projection: one lane-dense (B*S, E) @ (E, 3NH) MXU matmul. ----
    x = x_ref[...]                                               # (B*S, E)
    qkv = jnp.dot(x, w_qkv, preferred_element_type=jnp.float32) + b_qkv   # (B*S, 3NH)

    # ---- Causal mask generated in-kernel (2 iotas + compare; free VPU filler). ----
    qpos = jax.lax.broadcasted_iota(jnp.int32, (S, S), 0)
    kpos = jax.lax.broadcasted_iota(jnp.int32, (S, S), 1)
    mask = kpos > qpos                                   # True where key_pos > query_pos

    # ---- Per-(batch, head) attention on register-resident 2-D tiles. ----
    z_rows = []
    for b in range(B):
        r0 = b * S
        head_outs = []
        for n in range(N):
            c0 = n * H
            q = qkv[r0:r0 + S, c0:c0 + H] * sm_scale               # (S, H)
            k = qkv[r0:r0 + S, NH + c0:NH + c0 + H]                # (S, H)
            v = qkv[r0:r0 + S, 2 * NH + c0:2 * NH + c0 + H]        # (S, H)

            # scores = q @ k^T via the transposed-operand MXU path (no XLU transpose).
            scores = jax.lax.dot_general(
                q, k, (((1,), (1,)), ((), ())),
                preferred_element_type=jnp.float32)                # (S, S)
            scores = jnp.where(mask, EPSILON, scores)              # masked_fill

            m = jnp.max(scores, axis=-1, keepdims=True)
            e = jnp.exp(scores - m)
            d = jnp.sum(e, axis=-1, keepdims=True)
            p = e * pl.reciprocal(d, approx=True)                  # EUP reciprocal

            head_outs.append(
                jnp.dot(p, v, preferred_element_type=jnp.float32))  # (S, H)
        z_rows.append(jnp.concatenate(head_outs, axis=-1))          # (S, NH)
    z = jnp.concatenate(z_rows, axis=0)                             # (B*S, NH)

    # ---- Fused output projection + head-sum + bias: (B*S, NH) @ (NH, E) + b_O. ----
    out = jnp.dot(z, w_o, preferred_element_type=jnp.float32) + b_o
    o_ref[...] = out.astype(o_ref.dtype)


def prepare_attention_consts(w_q, b_q, w_k, b_k, w_v, b_v, w_o, b_o):
    """Pack all weights/biases into ONE contiguous, lane-padded f32 slab.

    Call once at parameter-init time (or let it constant-fold under jit) —
    it must NOT sit on the per-forward hot path.
    """
    N, E, H = w_q.shape
    NH = N * H
    r_wqkv, r_bqkv, r_wo, r_bo, rows, lanes = _const_slab_layout(E, NH)

    def to2d(w):  # (N, E, H) -> (E, N*H), column index = n*H + h
        return jnp.transpose(w, (1, 0, 2)).reshape(E, NH)

    w_qkv = jnp.concatenate([to2d(w_q), to2d(w_k), to2d(w_v)], axis=-1)  # (E, 3NH)
    b_qkv = jnp.concatenate(
        [b_q.reshape(1, NH), b_k.reshape(1, NH), b_v.reshape(1, NH)], axis=-1)
    w_o2 = w_o.reshape(NH, E)
    b_o2 = b_o.reshape(1, E)

    consts = jnp.zeros((rows, lanes), jnp.float32)
    consts = consts.at[r_wqkv:r_wqkv + E, 0:3 * NH].set(w_qkv.astype(jnp.float32))
    consts = consts.at[r_bqkv:r_bqkv + 1, 0:3 * NH].set(b_qkv.astype(jnp.float32))
    consts = consts.at[r_wo:r_wo + NH, 0:E].set(w_o2.astype(jnp.float32))
    consts = consts.at[r_bo:r_bo + 1, 0:E].set(b_o2.astype(jnp.float32))
    return consts


@functools.partial(jax.jit, static_argnames=("n_heads", "d_head"))
def attention_forward_packed(x, consts, *, n_heads, d_head):
    """x: (B, S, E) float32, consts: packed slab from prepare_attention_consts."""
    B, S, E = x.shape
    N, H = n_heads, d_head
    x2 = x.reshape(B * S, E)

    kernel = functools.partial(_attention_kernel, batch=B, seq=S,
                               n_heads=N, d_head=H, d_model=E)

    out2 = pl.pallas_call(
        kernel,
        out_shape=jax.ShapeDtypeStruct((B * S, E), x.dtype),
        grid=(1,),  # single step: whole problem fits comfortably in VMEM
        in_specs=[
            pl.BlockSpec((B * S, E), lambda i: (0, 0)),          # x (flattened tokens)
            pl.BlockSpec(consts.shape, lambda i: (0, 0)),        # packed constant slab
        ],
        out_specs=pl.BlockSpec((B * S, E), lambda i: (0, 0)),
        compiler_params=pltpu.CompilerParams(
            dimension_semantics=("arbitrary",)),
    )(x2, consts)

    return out2.reshape(B, S, E)


def attention_forward(x, w_q, b_q, w_k, b_k, w_v, b_v, w_o, b_o):
    """Convenience one-shot wrapper. For repeated calls, hoist
    prepare_attention_consts() out of the hot path and call
    attention_forward_packed directly."""
    consts = prepare_attention_consts(w_q, b_q, w_k, b_k, w_v, b_v, w_o, b_o)
    return attention_forward_packed(x, consts,
                                    n_heads=w_q.shape[0], d_head=w_q.shape[-1])


def attention_reference(x, w_q, b_q, w_k, b_k, w_v, b_v, w_o, b_o):
    """Pure-JAX reference mirroring the PyTorch forward exactly."""
    H = w_q.shape[-1]
    q = jnp.einsum('bse,neh->bsnh', x, w_q) + b_q
    k = jnp.einsum('bse,neh->bsnh', x, w_k) + b_k
    scores = jnp.einsum('bqnh,bknh->bnqk', q, k) / (H ** 0.5)
    S = scores.shape[-1]
    mask = jnp.triu(jnp.ones((S, S), dtype=bool), k=1)
    scores = jnp.where(mask[None, None], EPSILON, scores)
    probs = jax.nn.softmax(scores, axis=-1)
    v = jnp.einsum('bse,neh->bsnh', x, w_v) + b_v
    z = jnp.einsum('bnqk,bknh->bqnh', probs, v)
    result = jnp.einsum('bqnh,nhe->bqne', z, w_o)
    return jnp.sum(result, axis=2) + b_o


if __name__ == "__main__":
    # Config: n_heads=4, d_model=32, d_head=8, init_range=0.02
    B, S, E, N, H = 2, 8, 32, 4, 8
    init_range = 0.02

    key = jax.random.PRNGKey(0)
    ks = jax.random.split(key, 5)

    x = jax.random.normal(ks[0], (B, S, E), dtype=jnp.float32)
    w_q = init_range * jax.random.normal(ks[1], (N, E, H), dtype=jnp.float32)
    w_k = init_range * jax.random.normal(ks[2], (N, E, H), dtype=jnp.float32)
    w_v = init_range * jax.random.normal(ks[3], (N, E, H), dtype=jnp.float32)
    w_o = init_range * jax.random.normal(ks[4], (N, H, E), dtype=jnp.float32)
    b_q = jnp.zeros((N, H), dtype=jnp.float32)
    b_k = jnp.zeros((N, H), dtype=jnp.float32)
    b_v = jnp.zeros((N, H), dtype=jnp.float32)
    b_o = jnp.zeros((E,), dtype=jnp.float32)

    # Parameter prep hoisted out of the forward path (done once).
    consts = jax.block_until_ready(
        prepare_attention_consts(w_q, b_q, w_k, b_k, w_v, b_v, w_o, b_o))

    out = attention_forward_packed(x, consts, n_heads=N, d_head=H)
    out = jax.block_until_ready(out)

    ref = attention_reference(x, w_q, b_q, w_k, b_k, w_v, b_v, w_o, b_o)
    assert out.shape == (B, S, E)
    # approx reciprocal in the softmax -> slightly looser tolerance than exact divide.
    assert jnp.allclose(out, ref, atol=1e-4, rtol=1e-3), "mismatch vs reference"

    print("KERNEL_OK")
</pallas_src>

<mosaic_0001>
module attributes {stable_mosaic.version = 11 : i64} {
  func.func @_attention_kernel(%arg0: i32, %arg1: memref<16x32xf32, #tpu.memory_space<vmem>>, %arg2: memref<80x128xf32, #tpu.memory_space<vmem>>, %arg3: memref<16x32xf32, #tpu.memory_space<vmem>>) attributes {dimension_semantics = [#tpu.dimension_semantics<arbitrary>], iteration_bounds = array<i64: 1>, scalar_prefetch = 0 : i64, scratch_operands = 0 : i64, tpu.core_type = #tpu.core_type<tc>, window_params = [{pipeline_mode = #tpu.pipeline_mode<synchronous>, transform_indices = @transform_0, window_bounds = array<i64: 16, 32>}, {pipeline_mode = #tpu.pipeline_mode<synchronous>, transform_indices = @transform_1, window_bounds = array<i64: 80, 128>}, {pipeline_mode = #tpu.pipeline_mode<synchronous>, transform_indices = @transform_2, window_bounds = array<i64: 16, 32>}]} {
    %c0 = arith.constant 0 : index
    %c0_0 = arith.constant 0 : index
    %0 = vector.load %arg2[%c0, %c0_0] : memref<80x128xf32, #tpu.memory_space<vmem>>, vector<32x96xf32>
    %c32 = arith.constant 32 : index
    %c0_1 = arith.constant 0 : index
    %1 = vector.load %arg2[%c32, %c0_1] : memref<80x128xf32, #tpu.memory_space<vmem>>, vector<1x96xf32>
    %c40 = arith.constant 40 : index
    %c0_2 = arith.constant 0 : index
    %2 = vector.load %arg2[%c40, %c0_2] : memref<80x128xf32, #tpu.memory_space<vmem>>, vector<32x32xf32>
    %c72 = arith.constant 72 : index
    %c0_3 = arith.constant 0 : index
    %3 = vector.load %arg2[%c72, %c0_3] : memref<80x128xf32, #tpu.memory_space<vmem>>, vector<1x32xf32>
    %c0_4 = arith.constant 0 : index
    %c0_5 = arith.constant 0 : index
    %4 = vector.load %arg1[%c0_4, %c0_5] : memref<16x32xf32, #tpu.memory_space<vmem>>, vector<16x32xf32>
    %cst = arith.constant dense<0.000000e+00> : vector<16x96xf32>
    %5 = tpu.matmul %4, %0, %cst {dimension_numbers = #tpu.dot_dimension_numbers<[1], [0], [0], [1], [0, 0, 1, 1], [], []>} : vector<16x32xf32>, vector<32x96xf32>, vector<16x96xf32> -> vector<16x96xf32>
    %6 = vector.broadcast %1 : vector<1x96xf32> to vector<16x96xf32>
    %7 = arith.addf %5, %6 : vector<16x96xf32>
    %8 = tpu.iota {dimensions = array<i32: 0>} : vector<8x8xi32>
    %9 = tpu.iota {dimensions = array<i32: 1>} : vector<8x8xi32>
    %10 = arith.cmpi sgt, %9, %8 : vector<8x8xi32>
    %11 = vector.extract_strided_slice %7 {offsets = [0, 0], sizes = [8, 8], strides = [1, 1]} : vector<16x96xf32> to vector<8x8xf32>
    %cst_6 = arith.constant 0.353553385 : f32
    %12 = vector.broadcast %cst_6 : f32 to vector<8x8xf32>
    %13 = arith.mulf %11, %12 : vector<8x8xf32>
    %14 = vector.extract_strided_slice %7 {offsets = [0, 32], sizes = [8, 8], strides = [1, 1]} : vector<16x96xf32> to vector<8x8xf32>
    %15 = vector.extract_strided_slice %7 {offsets = [0, 64], sizes = [8, 8], strides = [1, 1]} : vector<16x96xf32> to vector<8x8xf32>
    %cst_7 = arith.constant dense<0.000000e+00> : vector<8x8xf32>
    %16 = tpu.matmul %13, %14, %cst_7 {dimension_numbers = #tpu.dot_dimension_numbers<[1], [1], [0], [0], [0, 0, 1, 0], [], []>} : vector<8x8xf32>, vector<8x8xf32>, vector<8x8xf32> -> vector<8x8xf32>
    %cst_8 = arith.constant -1.000000e+05 : f32
    %17 = vector.broadcast %cst_8 : f32 to vector<8x8xf32>
    %18 = arith.select %10, %17, %16 : vector<8x8xi1>, vector<8x8xf32>
    %cst_9 = arith.constant dense<0xFF800000> : vector<8xf32>
    %19 = vector.multi_reduction <maximumf>, %18, %cst_9 [1] : vector<8x8xf32> to vector<8xf32>
    %20 = vector.shape_cast %19 : vector<8xf32> to vector<8x1xf32>
    %21 = vector.broadcast %20 : vector<8x1xf32> to vector<8x8xf32>
    %22 = arith.subf %18, %21 : vector<8x8xf32>
    %23 = math.exp %22 : vector<8x8xf32>
    %cst_10 = arith.constant dense<0.000000e+00> : vector<8xf32>
    %24 = vector.multi_reduction <add>, %23, %cst_10 [1] : vector<8x8xf32> to vector<8xf32>
    %25 = vector.shape_cast %24 : vector<8xf32> to vector<8x1xf32>
    %26 = tpu.reciprocal %25 {approx = true} : vector<8x1xf32> -> vector<8x1xf32>
    %27 = vector.broadcast %26 : vector<8x1xf32> to vector<8x8xf32>
    %28 = arith.mulf %23, %27 : vector<8x8xf32>
    %cst_11 = arith.constant dense<0.000000e+00> : vector<8x8xf32>
    %29 = tpu.matmul %28, %15, %cst_11 {dimension_numbers = #tpu.dot_dimension_numbers<[1], [0], [0], [1], [0, 0, 1, 1], [], []>} : vector<8x8xf32>, vector<8x8xf32>, vector<8x8xf32> -> vector<8x8xf32>
    %30 = vector.extract_strided_slice %7 {offsets = [0, 8], sizes = [8, 8], strides = [1, 1]} : vector<16x96xf32> to vector<8x8xf32>
    %cst_12 = arith.constant 0.353553385 : f32
    %31 = vector.broadcast %cst_12 : f32 to vector<8x8xf32>
    %32 = arith.mulf %30, %31 : vector<8x8xf32>
    %33 = vector.extract_strided_slice %7 {offsets = [0, 40], sizes = [8, 8], strides = [1, 1]} : vector<16x96xf32> to vector<8x8xf32>
    %34 = vector.extract_strided_slice %7 {offsets = [0, 72], sizes = [8, 8], strides = [1, 1]} : vector<16x96xf32> to vector<8x8xf32>
    %cst_13 = arith.constant dense<0.000000e+00> : vector<8x8xf32>
    %35 = tpu.matmul %32, %33, %cst_13 {dimension_numbers = #tpu.dot_dimension_numbers<[1], [1], [0], [0], [0, 0, 1, 0], [], []>} : vector<8x8xf32>, vector<8x8xf32>, vector<8x8xf32> -> vector<8x8xf32>
    %cst_14 = arith.constant -1.000000e+05 : f32
    %36 = vector.broadcast %cst_14 : f32 to vector<8x8xf32>
    %37 = arith.select %10, %36, %35 : vector<8x8xi1>, vector<8x8xf32>
    %cst_15 = arith.constant dense<0xFF800000> : vector<8xf32>
    %38 = vector.multi_reduction <maximumf>, %37, %cst_15 [1] : vector<8x8xf32> to vector<8xf32>
    %39 = vector.shape_cast %38 : vector<8xf32> to vector<8x1xf32>
    %40 = vector.broadcast %39 : vector<8x1xf32> to vector<8x8xf32>
    %41 = arith.subf %37, %40 : vector<8x8xf32>
    %42 = math.exp %41 : vector<8x8xf32>
    %cst_16 = arith.constant dense<0.000000e+00> : vector<8xf32>
    %43 = vector.multi_reduction <add>, %42, %cst_16 [1] : vector<8x8xf32> to vector<8xf32>
    %44 = vector.shape_cast %43 : vector<8xf32> to vector<8x1xf32>
    %45 = tpu.reciprocal %44 {approx = true} : vector<8x1xf32> -> vector<8x1xf32>
    %46 = vector.broadcast %45 : vector<8x1xf32> to vector<8x8xf32>
    %47 = arith.mulf %42, %46 : vector<8x8xf32>
    %cst_17 = arith.constant dense<0.000000e+00> : vector<8x8xf32>
    %48 = tpu.matmul %47, %34, %cst_17 {dimension_numbers = #tpu.dot_dimension_numbers<[1], [0], [0], [1], [0, 0, 1, 1], [], []>} : vector<8x8xf32>, vector<8x8xf32>, vector<8x8xf32> -> vector<8x8xf32>
    %49 = vector.extract_strided_slice %7 {offsets = [0, 16], sizes = [8, 8], strides = [1, 1]} : vector<16x96xf32> to vector<8x8xf32>
    %cst_18 = arith.constant 0.353553385 : f32
    %50 = vector.broadcast %cst_18 : f32 to vector<8x8xf32>
    %51 = arith.mulf %49, %50 : vector<8x8xf32>
    %52 = vector.extract_strided_slice %7 {offsets = [0, 48], sizes = [8, 8], strides = [1, 1]} : vector<16x96xf32> to vector<8x8xf32>
    %53 = vector.extract_strided_slice %7 {offsets = [0, 80], sizes = [8, 8], strides = [1, 1]} : vector<16x96xf32> to vector<8x8xf32>
    %cst_19 = arith.constant dense<0.000000e+00> : vector<8x8xf32>
    %54 = tpu.matmul %51, %52, %cst_19 {dimension_numbers = #tpu.dot_dimension_numbers<[1], [1], [0], [0], [0, 0, 1, 0], [], []>} : vector<8x8xf32>, vector<8x8xf32>, vector<8x8xf32> -> vector<8x8xf32>
    %cst_20 = arith.constant -1.000000e+05 : f32
    %55 = vector.broadcast %cst_20 : f32 to vector<8x8xf32>
    %56 = arith.select %10, %55, %54 : vector<8x8xi1>, vector<8x8xf32>
    %cst_21 = arith.constant dense<0xFF800000> : vector<8xf32>
    %57 = vector.multi_reduction <maximumf>, %56, %cst_21 [1] : vector<8x8xf32> to vector<8xf32>
    %58 = vector.shape_cast %57 : vector<8xf32> to vector<8x1xf32>
    %59 = vector.broadcast %58 : vector<8x1xf32> to vector<8x8xf32>
    %60 = arith.subf %56, %59 : vector<8x8xf32>
    %61 = math.exp %60 : vector<8x8xf32>
    %cst_22 = arith.constant dense<0.000000e+00> : vector<8xf32>
    %62 = vector.multi_reduction <add>, %61, %cst_22 [1] : vector<8x8xf32> to vector<8xf32>
    %63 = vector.shape_cast %62 : vector<8xf32> to vector<8x1xf32>
    %64 = tpu.reciprocal %63 {approx = true} : vector<8x1xf32> -> vector<8x1xf32>
    %65 = vector.broadcast %64 : vector<8x1xf32> to vector<8x8xf32>
    %66 = arith.mulf %61, %65 : vector<8x8xf32>
    %cst_23 = arith.constant dense<0.000000e+00> : vector<8x8xf32>
    %67 = tpu.matmul %66, %53, %cst_23 {dimension_numbers = #tpu.dot_dimension_numbers<[1], [0], [0], [1], [0, 0, 1, 1], [], []>} : vector<8x8xf32>, vector<8x8xf32>, vector<8x8xf32> -> vector<8x8xf32>
    %68 = vector.extract_strided_slice %7 {offsets = [0, 24], sizes = [8, 8], strides = [1, 1]} : vector<16x96xf32> to vector<8x8xf32>
    %cst_24 = arith.constant 0.353553385 : f32
    %69 = vector.broadcast %cst_24 : f32 to vector<8x8xf32>
    %70 = arith.mulf %68, %69 : vector<8x8xf32>
    %71 = vector.extract_strided_slice %7 {offsets = [0, 56], sizes = [8, 8], strides = [1, 1]} : vector<16x96xf32> to vector<8x8xf32>
    %72 = vector.extract_strided_slice %7 {offsets = [0, 88], sizes = [8, 8], strides = [1, 1]} : vector<16x96xf32> to vector<8x8xf32>
    %cst_25 = arith.constant dense<0.000000e+00> : vector<8x8xf32>
    %73 = tpu.matmul %70, %71, %cst_25 {dimension_numbers = #tpu.dot_dimension_numbers<[1], [1], [0], [0], [0, 0, 1, 0], [], []>} : vector<8x8xf32>, vector<8x8xf32>, vector<8x8xf32> -> vector<8x8xf32>
    %cst_26 = arith.constant -1.000000e+05 : f32
    %74 = vector.broadcast %cst_26 : f32 to vector<8x8xf32>
    %75 = arith.select %10, %74, %73 : vector<8x8xi1>, vector<8x8xf32>
    %cst_27 = arith.constant dense<0xFF800000> : vector<8xf32>
    %76 = vector.multi_reduction <maximumf>, %75, %cst_27 [1] : vector<8x8xf32> to vector<8xf32>
    %77 = vector.shape_cast %76 : vector<8xf32> to vector<8x1xf32>
    %78 = vector.broadcast %77 : vector<8x1xf32> to vector<8x8xf32>
    %79 = arith.subf %75, %78 : vector<8x8xf32>
    %80 = math.exp %79 : vector<8x8xf32>
    %cst_28 = arith.constant dense<0.000000e+00> : vector<8xf32>
    %81 = vector.multi_reduction <add>, %80, %cst_28 [1] : vector<8x8xf32> to vector<8xf32>
    %82 = vector.shape_cast %81 : vector<8xf32> to vector<8x1xf32>
    %83 = tpu.reciprocal %82 {approx = true} : vector<8x1xf32> -> vector<8x1xf32>
    %84 = vector.broadcast %83 : vector<8x1xf32> to vector<8x8xf32>
    %85 = arith.mulf %80, %84 : vector<8x8xf32>
    %cst_29 = arith.constant dense<0.000000e+00> : vector<8x8xf32>
    %86 = tpu.matmul %85, %72, %cst_29 {dimension_numbers = #tpu.dot_dimension_numbers<[1], [0], [0], [1], [0, 0, 1, 1], [], []>} : vector<8x8xf32>, vector<8x8xf32>, vector<8x8xf32> -> vector<8x8xf32>
    %87 = tpu.concatenate %29, %48, %67, %86 in 1 : vector<8x8xf32>, vector<8x8xf32>, vector<8x8xf32>, vector<8x8xf32> -> vector<8x32xf32>
    %88 = vector.extract_strided_slice %7 {offsets = [8, 0], sizes = [8, 8], strides = [1, 1]} : vector<16x96xf32> to vector<8x8xf32>
    %cst_30 = arith.constant 0.353553385 : f32
    %89 = vector.broadcast %cst_30 : f32 to vector<8x8xf32>
    %90 = arith.mulf %88, %89 : vector<8x8xf32>
    %91 = vector.extract_strided_slice %7 {offsets = [8, 32], sizes = [8, 8], strides = [1, 1]} : vector<16x96xf32> to vector<8x8xf32>
    %92 = vector.extract_strided_slice %7 {offsets = [8, 64], sizes = [8, 8], strides = [1, 1]} : vector<16x96xf32> to vector<8x8xf32>
    %cst_31 = arith.constant dense<0.000000e+00> : vector<8x8xf32>
    %93 = tpu.matmul %90, %91, %cst_31 {dimension_numbers = #tpu.dot_dimension_numbers<[1], [1], [0], [0], [0, 0, 1, 0], [], []>} : vector<8x8xf32>, vector<8x8xf32>, vector<8x8xf32> -> vector<8x8xf32>
    %cst_32 = arith.constant -1.000000e+05 : f32
    %94 = vector.broadcast %cst_32 : f32 to vector<8x8xf32>
    %95 = arith.select %10, %94, %93 : vector<8x8xi1>, vector<8x8xf32>
    %cst_33 = arith.constant dense<0xFF800000> : vector<8xf32>
    %96 = vector.multi_reduction <maximumf>, %95, %cst_33 [1] : vector<8x8xf32> to vector<8xf32>
    %97 = vector.shape_cast %96 : vector<8xf32> to vector<8x1xf32>
    %98 = vector.broadcast %97 : vector<8x1xf32> to vector<8x8xf32>
    %99 = arith.subf %95, %98 : vector<8x8xf32>
    %100 = math.exp %99 : vector<8x8xf32>
    %cst_34 = arith.constant dense<0.000000e+00> : vector<8xf32>
    %101 = vector.multi_reduction <add>, %100, %cst_34 [1] : vector<8x8xf32> to vector<8xf32>
    %102 = vector.shape_cast %101 : vector<8xf32> to vector<8x1xf32>
    %103 = tpu.reciprocal %102 {approx = true} : vector<8x1xf32> -> vector<8x1xf32>
    %104 = vector.broadcast %103 : vector<8x1xf32> to vector<8x8xf32>
    %105 = arith.mulf %100, %104 : vector<8x8xf32>
    %cst_35 = arith.constant dense<0.000000e+00> : vector<8x8xf32>
    %106 = tpu.matmul %105, %92, %cst_35 {dimension_numbers = #tpu.dot_dimension_numbers<[1], [0], [0], [1], [0, 0, 1, 1], [], []>} : vector<8x8xf32>, vector<8x8xf32>, vector<8x8xf32> -> vector<8x8xf32>
    %107 = vector.extract_strided_slice %7 {offsets = [8, 8], sizes = [8, 8], strides = [1, 1]} : vector<16x96xf32> to vector<8x8xf32>
    %cst_36 = arith.constant 0.353553385 : f32
    %108 = vector.broadcast %cst_36 : f32 to vector<8x8xf32>
    %109 = arith.mulf %107, %108 : vector<8x8xf32>
    %110 = vector.extract_strided_slice %7 {offsets = [8, 40], sizes = [8, 8], strides = [1, 1]} : vector<16x96xf32> to vector<8x8xf32>
    %111 = vector.extract_strided_slice %7 {offsets = [8, 72], sizes = [8, 8], strides = [1, 1]} : vector<16x96xf32> to vector<8x8xf32>
    %cst_37 = arith.constant dense<0.000000e+00> : vector<8x8xf32>
    %112 = tpu.matmul %109, %110, %cst_37 {dimension_numbers = #tpu.dot_dimension_numbers<[1], [1], [0], [0], [0, 0, 1, 0], [], []>} : vector<8x8xf32>, vector<8x8xf32>, vector<8x8xf32> -> vector<8x8xf32>
    %cst_38 = arith.constant -1.000000e+05 : f32
    %113 = vector.broadcast %cst_38 : f32 to vector<8x8xf32>
    %114 = arith.select %10, %113, %112 : vector<8x8xi1>, vector<8x8xf32>
    %cst_39 = arith.constant dense<0xFF800000> : vector<8xf32>
    %115 = vector.multi_reduction <maximumf>, %114, %cst_39 [1] : vector<8x8xf32> to vector<8xf32>
    %116 = vector.shape_cast %115 : vector<8xf32> to vector<8x1xf32>
    %117 = vector.broadcast %116 : vector<8x1xf32> to vector<8x8xf32>
    %118 = arith.subf %114, %117 : vector<8x8xf32>
    %119 = math.exp %118 : vector<8x8xf32>
    %cst_40 = arith.constant dense<0.000000e+00> : vector<8xf32>
    %120 = vector.multi_reduction <add>, %119, %cst_40 [1] : vector<8x8xf32> to vector<8xf32>
    %121 = vector.shape_cast %120 : vector<8xf32> to vector<8x1xf32>
    %122 = tpu.reciprocal %121 {approx = true} : vector<8x1xf32> -> vector<8x1xf32>
    %123 = vector.broadcast %122 : vector<8x1xf32> to vector<8x8xf32>
    %124 = arith.mulf %119, %123 : vector<8x8xf32>
    %cst_41 = arith.constant dense<0.000000e+00> : vector<8x8xf32>
    %125 = tpu.matmul %124, %111, %cst_41 {dimension_numbers = #tpu.dot_dimension_numbers<[1], [0], [0], [1], [0, 0, 1, 1], [], []>} : vector<8x8xf32>, vector<8x8xf32>, vector<8x8xf32> -> vector<8x8xf32>
    %126 = vector.extract_strided_slice %7 {offsets = [8, 16], sizes = [8, 8], strides = [1, 1]} : vector<16x96xf32> to vector<8x8xf32>
    %cst_42 = arith.constant 0.353553385 : f32
    %127 = vector.broadcast %cst_42 : f32 to vector<8x8xf32>
    %128 = arith.mulf %126, %127 : vector<8x8xf32>
    %129 = vector.extract_strided_slice %7 {offsets = [8, 48], sizes = [8, 8], strides = [1, 1]} : vector<16x96xf32> to vector<8x8xf32>
    %130 = vector.extract_strided_slice %7 {offsets = [8, 80], sizes = [8, 8], strides = [1, 1]} : vector<16x96xf32> to vector<8x8xf32>
    %cst_43 = arith.constant dense<0.000000e+00> : vector<8x8xf32>
    %131 = tpu.matmul %128, %129, %cst_43 {dimension_numbers = #tpu.dot_dimension_numbers<[1], [1], [0], [0], [0, 0, 1, 0], [], []>} : vector<8x8xf32>, vector<8x8xf32>, vector<8x8xf32> -> vector<8x8xf32>
    %cst_44 = arith.constant -1.000000e+05 : f32
    %132 = vector.broadcast %cst_44 : f32 to vector<8x8xf32>
    %133 = arith.select %10, %132, %131 : vector<8x8xi1>, vector<8x8xf32>
    %cst_45 = arith.constant dense<0xFF800000> : vector<8xf32>
    %134 = vector.multi_reduction <maximumf>, %133, %cst_45 [1] : vector<8x8xf32> to vector<8xf32>
    %135 = vector.shape_cast %134 : vector<8xf32> to vector<8x1xf32>
    %136 = vector.broadcast %135 : vector<8x1xf32> to vector<8x8xf32>
    %137 = arith.subf %133, %136 : vector<8x8xf32>
    %138 = math.exp %137 : vector<8x8xf32>
    %cst_46 = arith.constant dense<0.000000e+00> : vector<8xf32>
    %139 = vector.multi_reduction <add>, %138, %cst_46 [1] : vector<8x8xf32> to vector<8xf32>
    %140 = vector.shape_cast %139 : vector<8xf32> to vector<8x1xf32>
    %141 = tpu.reciprocal %140 {approx = true} : vector<8x1xf32> -> vector<8x1xf32>
    %142 = vector.broadcast %141 : vector<8x1xf32> to vector<8x8xf32>
    %143 = arith.mulf %138, %142 : vector<8x8xf32>
    %cst_47 = arith.constant dense<0.000000e+00> : vector<8x8xf32>
    %144 = tpu.matmul %143, %130, %cst_47 {dimension_numbers = #tpu.dot_dimension_numbers<[1], [0], [0], [1], [0, 0, 1, 1], [], []>} : vector<8x8xf32>, vector<8x8xf32>, vector<8x8xf32> -> vector<8x8xf32>
    %145 = vector.extract_strided_slice %7 {offsets = [8, 24], sizes = [8, 8], strides = [1, 1]} : vector<16x96xf32> to vector<8x8xf32>
    %cst_48 = arith.constant 0.353553385 : f32
    %146 = vector.broadcast %cst_48 : f32 to vector<8x8xf32>
    %147 = arith.mulf %145, %146 : vector<8x8xf32>
    %148 = vector.extract_strided_slice %7 {offsets = [8, 56], sizes = [8, 8], strides = [1, 1]} : vector<16x96xf32> to vector<8x8xf32>
    %149 = vector.extract_strided_slice %7 {offsets = [8, 88], sizes = [8, 8], strides = [1, 1]} : vector<16x96xf32> to vector<8x8xf32>
    %cst_49 = arith.constant dense<0.000000e+00> : vector<8x8xf32>
    %150 = tpu.matmul %147, %148, %cst_49 {dimension_numbers = #tpu.dot_dimension_numbers<[1], [1], [0], [0], [0, 0, 1, 0], [], []>} : vector<8x8xf32>, vector<8x8xf32>, vector<8x8xf32> -> vector<8x8xf32>
    %cst_50 = arith.constant -1.000000e+05 : f32
    %151 = vector.broadcast %cst_50 : f32 to vector<8x8xf32>
    %152 = arith.select %10, %151, %150 : vector<8x8xi1>, vector<8x8xf32>
    %cst_51 = arith.constant dense<0xFF800000> : vector<8xf32>
    %153 = vector.multi_reduction <maximumf>, %152, %cst_51 [1] : vector<8x8xf32> to vector<8xf32>
    %154 = vector.shape_cast %153 : vector<8xf32> to vector<8x1xf32>
    %155 = vector.broadcast %154 : vector<8x1xf32> to vector<8x8xf32>
    %156 = arith.subf %152, %155 : vector<8x8xf32>
    %157 = math.exp %156 : vector<8x8xf32>
    %cst_52 = arith.constant dense<0.000000e+00> : vector<8xf32>
    %158 = vector.multi_reduction <add>, %157, %cst_52 [1] : vector<8x8xf32> to vector<8xf32>
    %159 = vector.shape_cast %158 : vector<8xf32> to vector<8x1xf32>
    %160 = tpu.reciprocal %159 {approx = true} : vector<8x1xf32> -> vector<8x1xf32>
    %161 = vector.broadcast %160 : vector<8x1xf32> to vector<8x8xf32>
    %162 = arith.mulf %157, %161 : vector<8x8xf32>
    %cst_53 = arith.constant dense<0.000000e+00> : vector<8x8xf32>
    %163 = tpu.matmul %162, %149, %cst_53 {dimension_numbers = #tpu.dot_dimension_numbers<[1], [0], [0], [1], [0, 0, 1, 1], [], []>} : vector<8x8xf32>, vector<8x8xf32>, vector<8x8xf32> -> vector<8x8xf32>
    %164 = tpu.concatenate %106, %125, %144, %163 in 1 : vector<8x8xf32>, vector<8x8xf32>, vector<8x8xf32>, vector<8x8xf32> -> vector<8x32xf32>
    %165 = tpu.concatenate %87, %164 in 0 : vector<8x32xf32>, vector<8x32xf32> -> vector<16x32xf32>
    %cst_54 = arith.constant dense<0.000000e+00> : vector<16x32xf32>
    %166 = tpu.matmul %165, %2, %cst_54 {dimension_numbers = #tpu.dot_dimension_numbers<[1], [0], [0], [1], [0, 0, 1, 1], [], []>} : vector<16x32xf32>, vector<32x32xf32>, vector<16x32xf32> -> vector<16x32xf32>
    %167 = vector.broadcast %3 : vector<1x32xf32> to vector<16x32xf32>
    %168 = arith.addf %166, %167 : vector<16x32xf32>
    %c0_55 = arith.constant 0 : index
    %c0_56 = arith.constant 0 : index
    %169 = vector.load %arg3[%c0_55, %c0_56] : memref<16x32xf32, #tpu.memory_space<vmem>>, vector<16x32xf32>
    tpu.vector_store %arg3[%c0_55, %c0_56], %168 {strides = array<i32>} : memref<16x32xf32, #tpu.memory_space<vmem>>, vector<16x32xf32>,
    return
  }
  func.func @transform_0(%arg0: i32) -> (i32, i32) {
    %c0_i32 = arith.constant 0 : i32
    %c0_i32_0 = arith.constant 0 : i32
    %c0_i32_1 = arith.constant 0 : i32
    return %c0_i32, %c0_i32_0 : i32, i32
  }
  func.func @transform_1(%arg0: i32) -> (i32, i32) {
    %c0_i32 = arith.constant 0 : i32
    %c0_i32_0 = arith.constant 0 : i32
    %c0_i32_1 = arith.constant 0 : i32
    return %c0_i32, %c0_i32_0 : i32, i32
  }
  func.func @transform_2(%arg0: i32) -> (i32, i32) {
    %c0_i32 = arith.constant 0 : i32
    %c0_i32_0 = arith.constant 0 : i32
    %c0_i32_1 = arith.constant 0 : i32
    return %c0_i32, %c0_i32_0 : i32, i32
  }
}

</mosaic_0001>

<bundles_post_ra>
// kernel: attention_forward_packed.1
= control target key start
LH: loop header
LB: loop body
LE: loop exit
PB: predicated region body
PF: predicated region fallthrough
CT: control target
= control target key end

     0   :  { %7 = vsyncpa [#allocation3], 0  ;;  %s2198_s0 = inlined_call_operand.hbm [shape: f32[16,32], index: 0, kind: input, shape index: {}]   ;;  %s2199_s1 = inlined_call_operand.hbm [shape: f32[80,128], index: 1, kind: input, shape index: {}]   ;;  %s2200_s2 = inlined_call_operand.hbm [shape: f32[16,32], index: 2, kind: output, shape index: {}]  }
   0x1   :  { %8 = vsyncpa [#allocation6], 0 }
   0x2   :  { %9 = vsyncpa [#allocation4], 0  ;;  %s1927_s9 = smov [#allocation2]   ;;  %s1855_s13 = scalar_lea.hbm %s2198_s0, 256 }
   0x3   :  { %s15_s10 = sshll.u32 %s1927_s9, 4  ;;  %p1856_p0 = scmp.ne.s32.totalorder %s2198_s0, %s1855_s13  ;;  %s16_s10 = int_to_ptr.vmem [resolvable:$true] %s15_s10 }
   0x4   :  { %p1859_p1 = scmp.lt.u32.totalorder %s1855_s13, %s2198_s0 }
   0x6   :  { %p1861_p2 = pnand %p1859_p1, %p1856_p0 }
   0x8   :  { %1864 = shalt.err (!%p1861_p2)
}
   0x9   :  { %s1865_s18 = scalar_lea.vmem %s16_s10, 256  ;;  %p1870_p4 = scmp.lt.s32.totalorder %s16_s10, %s16_s10 }
   0xa   :  { %p1866_p3 = scmp.ne.s32.totalorder %s16_s10, %s1865_s18  ;;  %p1871_p5 = scmp.lt.s32.totalorder %s1865_s18, %s1865_s18 }
   0xc   :  { %p1872_p6 = por %p1871_p5, %p1870_p4 }
   0xe   :  { %p1873_p7 = pnand %p1872_p6, %p1866_p3 }
  0x10   :  { %1876 = shalt.err (!%p1873_p7)
}
  0x11   :  { %s1928_s19 = smov 128   ;;  %s1929_s20 = smov 8  }
  0x12   :  { %21 = dma.hbm_to_vmem [thread:$0]  %s2198_s0, 256, %s16_s10, [#allocation3], %s1928_s19, %s1928_s19, %s1929_s20  }
  0x13   :  { %s1930_s23 = smov [#allocation5]   ;;  %s1877_s27 = scalar_lea.hbm %s2199_s1, 1280 }
  0x14   :  { %s27_s24 = sshll.u32 %s1930_s23, 4  ;;  %p1878_p8 = scmp.ne.s32.totalorder %s2199_s1, %s1877_s27  ;;  %s28_s24 = int_to_ptr.vmem [resolvable:$true] %s27_s24 }
  0x15   :  { %p1881_p9 = scmp.lt.u32.totalorder %s1877_s27, %s2199_s1 }
  0x17   :  { %p1883_p10 = pnand %p1881_p9, %p1878_p8 }
  0x19   :  { %1886 = shalt.err (!%p1883_p10)
}
  0x1a   :  { %s1887_s4 = scalar_lea.vmem %s28_s24, 1280  ;;  %p1892_p12 = scmp.lt.s32.totalorder %s28_s24, %s28_s24 }
  0x1b   :  { %p1888_p11 = scmp.ne.s32.totalorder %s28_s24, %s1887_s4  ;;  %p1893_p13 = scmp.lt.s32.totalorder %s1887_s4, %s1887_s4 }
  0x1d   :  { %p1894_p0 = por %p1893_p13, %p1892_p12 }
  0x1f   :  { %p1895_p1 = pnand %p1894_p0, %p1888_p11 }
  0x21   :  { %1898 = shalt.err (!%p1895_p1)
}
  0x22   :  { %33 = dma.hbm_to_vmem [thread:$0]  %s2199_s1, 1280, %s28_s24, [#allocation6], %s1928_s19, %s1928_s19, %s1929_s20  }
  0x23   :  { %1921 = dma.done.wait [#allocation3], 256  }
  0x24   :  { %1922 = vsyncadd [#allocation3], 4294967040 }
  0x25   :  { %1923 = dma.done.wait [#allocation6], 1280  }
  0x26   :  { %1924 = vsyncadd [#allocation6], 4294966016  ;;  %vm56_vm0 = vcmask 261120   ;;  %v40_v0 = vld [vmem:[#allocation5] sm:$0xff]  ;;  %v41_v1 = vld [vmem:[#allocation5 + $0x8] sm:$0xff]  ;;  %v1931_v8 = vmov 0.0   ;;  %v138_v21 = vlaneseq }
  0x27   :  { %v42_v2 = vld [vmem:[#allocation5 + $0x10] sm:$0xff]  ;;  %v1787_v3 = vpack.c.bf16 %v41_v1, %v40_v0  ;;  %v43_v4 = vld [vmem:[#allocation5 + $0x18] sm:$0xff]  ;;  %1696 = vmatprep.subr.mxu1 %v1931_v8  ;;  %vm1932_vm1 = vmmov 0   ;;  %v1611_v9 = vld [vmem:[#allocation5 + $0x20] ss:$0 sm:$0xff]  ;;  %s1933_s1 = smov 64  }
  0x28   :  { %v50_v5 = vld [vmem:[#allocation2] sm:$0xff]  ;;  %v1791_v6 = vpack.c.bf16 %v43_v4, %v42_v2  ;;  %v51_v7 = vld [vmem:[#allocation2 + $0x8] sm:$0xff]  ;;  %1698 = vmatprep.mubr.msk.f32.mxu1 %vm1932_vm1, %v1931_v8  ;;  %s1934_s6 = smov 96   ;;  %s1935_s7 = smov 88   ;;  %vm147_vm2 = vcmask 64512   ;;  %v139_v22 = vshrl.u32 %v138_v21, 7 }
  0x29   :  { %1693 = vmatprep.mubr.msk.f32.mxu0 %vm56_vm0, %v50_v5  ;;  %1788 = vmatprep.subr.bf16.mxu0 %v1787_v3  ;;  %s1936_s8 = smov 120   ;;  %s1937_s9 = smov 80   ;;  %v141_v23 = vand.u32 127, %v138_v21  ;;  %vm822_vm4 = vcmask 130048   ;;  %vm824_vm5 = vcmask 195584  }
  0x2a   :  { %1790 = vmatpush3.bf16.msra.mxu0 %v1787_v3  ;;  %s1938_s10 = smov 112   ;;  %s1939_s11 = smov 104  }
  0x2b   :  { %1792 = vmatprep.subr.bf16.mxu0 %v1791_v6  ;;  %vm2031_vm3 = vcmp.gt.s32.totalorder %v141_v23, %v139_v22  ;;  %s1940_s12 = smov 72   ;;  %s1941_s13 = smov 48  }
  0x2c   :  { %s1942_s14 = smov 56   ;;  %s1943_s15 = smov 40  }
  0x2d   :  { %s1944_s16 = smov 16   ;;  %s1945_s17 = smov 24  }
  0x2e   :  { %1794 = vmatpush3.bf16.msra.mxu0 %v1791_v6  ;;  %s1946_s18 = smov [#allocation7]  }
  0x2f   :  { %1716 = vmatprep.subr.mxu0 %v1931_v8  ;;  %s1598_s21 = sshll.u32 %s1946_s18, 4  ;;  %s1599_s21 = int_to_ptr.vmem [resolvable:$true] %s1598_s21 }
  0x30   :  { %s1899_s22 = scalar_lea.vmem %s1599_s21, 256  ;;  %p1904_p3 = scmp.lt.s32.totalorder %s1599_s21, %s1599_s21 }
  0x31   :  { %1694 = vmatmul.mubr.msk.f32.vlgmr.msra.gmra.mrb[0].mxu0 %vm56_vm0, %v51_v7  ;;  %p1900_p2 = scmp.ne.s32.totalorder %s1599_s21, %s1899_s22  ;;  %p1905_p4 = scmp.lt.s32.totalorder %s1899_s22, %s1899_s22 }
  0x32   :  { %1718 = vmatprep.mubr.msk.f32.mxu0 %vm1932_vm1, %v1931_v8 }
  0x33   :  { %p1906_p5 = por %p1905_p4, %p1904_p3 }
  0x35   :  { %p1907_p6 = pnand %p1906_p5, %p1900_p2 }
 0x104   :  { %v1695_v10 = vpop.f32.mrb[0].mxu0 }
 0x105   :  { %v2000_v11 = vadd.f32 %v1695_v10, %v1611_v9  ;;  %v129_v12 = vpop.f32.mrb[1].mxu0 }
 0x106   :  { %v2002_v13 = vadd.f32 %v1611_v9, %v129_v12 }
 0x107   :  { %v826_v31 = vmul.f32 0.35355338, %v2000_v11 }
 0x108   :  { %235 = vrot.lane.b32.xlu1 %v2002_v13, %s1933_s1  ;;  %145 = vrot.lane.b32.xlu0 %v2002_v13, %s1934_s6  ;;  %v143_v14 = vmul.f32 0.35355338, %v2002_v13 }
 0x10c   :  { %313 = vrot.lane.b32.xlu1 %v2002_v13, %s1935_s7 }
 0x110   :  { %311 = vrot.lane.b32.xlu1 %v143_v14, %s1936_s8 }
 0x114   :  { %479 = vrot.lane.b32.xlu1 %v2002_v13, %s1937_s9 }
 0x118   :  { %477 = vrot.lane.b32.xlu1 %v143_v14, %s1938_s10 }
 0x11c   :  { %643 = vrot.lane.b32.xlu1 %v143_v14, %s1939_s11 }
 0x17a   :  { %v236_v15 = vpop.permute.xlu1 %235  ;;  %v146_v16 = vpop.permute.xlu0 %145 }
 0x17b   :  { %1697 = vmatpush3.xpose.msk.msra.mxu1 %vm147_vm2, %v146_v16 }
 0x17c   :  { %1701 = vmatprep.subr.mxu1 %v1931_v8 }
 0x17e   :  { %v2018_v17 = vpop.permute.xlu1 %313  ;;  %1699 = vmatmul.mubr.msk.f32.vlgmr.msra.gmra.mrb[0].mxu1 %vm147_vm2, %v143_v14 }
 0x17f   :  { %1702 = vmatpush3.msra.mxu1 %v236_v15  ;;  %1703 = vmatprep.mubr.msk.f32.mxu1 %vm1932_vm1, %v1931_v8 }
 0x180   :  { %1706 = vmatprep.subr.mxu1 %v1931_v8 }
 0x182   :  { %v2024_v18 = vpop.permute.xlu1 %311 }
 0x186   :  { %v480_v19 = vpop.permute.xlu1 %479 }
 0x187   :  { %1717 = vmatpush3.xpose.msk.msra.mxu0 %vm147_vm2, %v480_v19 }
 0x188   :  { %1726 = vmatprep.subr.mxu0 %v1931_v8 }
 0x18a   :  { %v478_v20 = vpop.permute.xlu1 %477 }
 0x18b   :  { %1719 = vmatmul.mubr.msk.f32.vlgmr.msra.gmra.mrb[2].mxu0 %vm147_vm2, %v478_v20 }
 0x18c   :  { %1728 = vmatprep.mubr.msk.f32.mxu0 %vm1932_vm1, %v1931_v8 }
 0x18e   :  { %v644_v38 = vpop.permute.xlu1 %643 }
 0x251   :  { %v219_v25 = vpop.f32.mrb[0].mxu1 }
 0x252   :  { %v223_v26 = vsel %vm2031_vm3, -100000.0, %v219_v25  ;;  %v1700_v27 = vpop.f32.mrb[1].mxu1 }
 0x253   :  { %v224_v28 = vsel %vm147_vm2, %v223_v26, -inf }
 0x254   :  { %225 = vmax.xlane.f32.xlu0 %v224_v28 }
 0x25e   :  { %v551_v29 = vpop.f32.mrb[2].mxu0 }
 0x25f   :  { %v1720_v30 = vpop.f32.mrb[3].mxu0  ;;  %v2044_v32 = vsel %vm2031_vm3, -100000.0, %v551_v29 }
 0x260   :  { %v556_v33 = vsel %vm147_vm2, %v2044_v32, -inf }
 0x26a   :  { %645 = vrot.lane.b32.xlu0 %v2002_v13, %s1940_s12 }
 0x26e   :  { %1159 = vrot.lane.b32.xlu0 %v826_v31, %s1938_s10 }
 0x272   :  { %1325 = vrot.lane.b32.xlu0 %v826_v31, %s1939_s11 }
 0x291   :  { %557 = vmax.xlane.f32.xlu0 %v556_v33 }
 0x2e1   :  { %v226_v34 = vpop.xlane.xlu0 %225 }
 0x2e2   :  { %v227_v35 = vsub.f32 %v223_v26, %v226_v34 }
 0x2e4   :  { %v228_v36 = vmul.f32 1.442695, %v227_v35 }
 0x2e5   :  { %v646_v37 = vpop.permute.xlu0 %645 }
 0x2e6   :  { %1823 = vpow2.f32 %v228_v36  ;;  %1727 = vmatpush3.xpose.msk.msra.mxu0 %vm147_vm2, %v646_v37 }
 0x2e7   :  { %1736 = vmatprep.subr.mxu0 %v1931_v8 }
 0x2e9   :  { %1729 = vmatmul.mubr.msk.f32.vlgmr.msra.gmra.mrb[4].mxu0 %vm147_vm2, %v644_v38  ;;  %v1160_v48 = vpop.permute.xlu0 %1159 }
 0x2ea   :  { %1738 = vmatprep.mubr.msk.f32.mxu0 %vm1932_vm1, %v1931_v8 }
 0x2ed   :  { %v1326_v50 = vpop.permute.xlu0 %1325 }
 0x2f0   :  { %v1824_v39 = vpop.eup %1823 }
 0x2f1   :  { %v230_v40 = vsel %vm147_vm2, %v1824_v39, 0.0 }
 0x2f2   :  { %231 = vadd.xlane.f32.xlu1 %v230_v40 }
 0x303   :  { %828 = vrot.lane.b32.xlu1 %v2000_v11, %s1934_s6 }
 0x307   :  { %995 = vrot.lane.b32.xlu1 %v2000_v11, %s1935_s7 }
 0x30b   :  { %993 = vrot.lane.b32.xlu1 %v826_v31, %s1936_s8 }
 0x30f   :  { %1161 = vrot.lane.b32.xlu1 %v2000_v11, %s1937_s9 }
 0x313   :  { %1327 = vrot.lane.b32.xlu1 %v2000_v11, %s1940_s12 }
 0x31e   :  { %v558_v55 = vpop.xlane.xlu0 %557 }
 0x31f   :  { %v559_v58 = vsub.f32 %v2044_v32, %v558_v55 }
 0x321   :  { %v560_v61 = vmul.f32 1.442695, %v559_v58 }
 0x37f   :  { %v232_v41 = vpop.xlane.xlu1 %231 }
 0x380   :  { %1825 = vrcp.f32 %v232_v41 }
 0x381   :  { %1827 = vpow2.f32 %v560_v61 }
 0x383   :  { %v829_v42 = vpop.permute.xlu1 %828 }
 0x384   :  { %1737 = vmatpush3.xpose.msk.msra.mxu0 %vm147_vm2, %v829_v42 }
 0x385   :  { %1746 = vmatprep.subr.mxu0 %v1931_v8 }
 0x387   :  { %v996_v43 = vpop.permute.xlu1 %995  ;;  %1739 = vmatmul.mubr.msk.f32.vlgmr.msra.gmra.mrb[6].mxu0 %vm147_vm2, %v826_v31 }
 0x388   :  { %1747 = vmatpush3.xpose.msk.msra.mxu0 %vm147_vm2, %v996_v43  ;;  %1748 = vmatprep.mubr.msk.f32.mxu0 %vm1932_vm1, %v1931_v8 }
 0x389   :  { %1756 = vmatprep.subr.mxu0 %v1931_v8 }
 0x38a   :  { %v1826_v44 = vpop.eup %1825 }
 0x38b   :  { %v234_v45 = vmul.f32 %v1826_v44, %v1824_v39  ;;  %v994_v46 = vpop.permute.xlu1 %993  ;;  %v2109_v21 = vpop.eup %1827 }
 0x38c   :  { %1749 = vmatmul.mubr.msk.f32.vlgmr.msra.gmra.mrb[8].mxu0 %vm147_vm2, %v994_v46  ;;  %v562_v25 = vsel %vm147_vm2, %v2109_v21, 0.0 }
 0x38d   :  { %1704 = vmatmul.mubr.msk.f32.vlgmr.msra.gmra.mrb[2].mxu1 %vm147_vm2, %v234_v45  ;;  %1758 = vmatprep.mubr.msk.f32.mxu0 %vm1932_vm1, %v1931_v8 }
 0x38e   :  { %1707 = vmatpush3.xpose.msk.msra.mxu1 %vm147_vm2, %v2018_v17  ;;  %1708 = vmatprep.mubr.msk.f32.mxu1 %vm1932_vm1, %v1931_v8 }
 0x38f   :  { %v1162_v47 = vpop.permute.xlu1 %1161  ;;  %1711 = vmatprep.subr.mxu1 %v1931_v8 }
 0x390   :  { %1757 = vmatpush3.xpose.msk.msra.mxu0 %vm147_vm2, %v1162_v47 }
 0x391   :  { %1709 = vmatmul.mubr.msk.f32.vlgmr.msra.gmra.mrb[4].mxu1 %vm147_vm2, %v2024_v18  ;;  %1766 = vmatprep.subr.mxu0 %v1931_v8 }
 0x392   :  { %1713 = vmatprep.mubr.msk.f32.mxu1 %vm1932_vm1, %v1931_v8 }
 0x393   :  { %v1328_v49 = vpop.permute.xlu1 %1327  ;;  %1759 = vmatmul.mubr.msk.f32.vlgmr.msra.gmra.mrb[10].mxu0 %vm147_vm2, %v1160_v48 }
 0x394   :  { %1767 = vmatpush3.xpose.msk.msra.mxu0 %vm147_vm2, %v1328_v49  ;;  %1768 = vmatprep.mubr.msk.f32.mxu0 %vm1932_vm1, %v1931_v8 }
 0x397   :  { %1769 = vmatmul.mubr.msk.f32.vlgmr.msra.gmra.mrb[12].mxu0 %vm147_vm2, %v1326_v50 }
 0x3bc   :  { %v717_v51 = vpop.f32.mrb[4].mxu0 }
 0x3bd   :  { %v721_v52 = vsel %vm2031_vm3, -100000.0, %v717_v51  ;;  %v1730_v53 = vpop.f32.mrb[5].mxu0 }
 0x3be   :  { %v722_v54 = vsel %vm147_vm2, %v721_v52, -inf }
 0x3bf   :  { %723 = vmax.xlane.f32.xlu0 %v722_v54 }
 0x44c   :  { %v724_v56 = vpop.xlane.xlu0 %723 }
 0x44d   :  { %v725_v60 = vsub.f32 %v721_v52, %v724_v56 }
 0x44f   :  { %v726_v2 = vmul.f32 1.442695, %v725_v60 }
 0x451   :  { %1829 = vpow2.f32 %v726_v2 }
 0x45a   :  { %v901_v57 = vpop.f32.mrb[6].mxu0 }
 0x45b   :  { %v1740_v59 = vpop.f32.mrb[7].mxu0  ;;  %v905_v12 = vsel %vm2031_vm3, -100000.0, %v901_v57  ;;  %v2112_v23 = vpop.eup %1829 }
 0x45c   :  { %v906_v16 = vsel %vm147_vm2, %v905_v12, -inf  ;;  %v728_v24 = vsel %vm147_vm2, %v2112_v23, 0.0 }
 0x45f   :  { %v1067_v62 = vpop.f32.mrb[8].mxu0 }
 0x460   :  { %v1071_v63 = vsel %vm2031_vm3, -100000.0, %v1067_v62  ;;  %v2095_v0 = vpop.f32.mrb[2].mxu1  ;;  %v1750_v1 = vpop.f32.mrb[9].mxu0 }
 0x461   :  { %v1705_v3 = vpop.f32.mrb[3].mxu1  ;;  %v1072_v4 = vsel %vm147_vm2, %v1071_v63, -inf }
 0x462   :  { %1073 = vmax.xlane.f32.xlu0 %v1072_v4 }
 0x464   :  { %v385_v5 = vpop.f32.mrb[4].mxu1 }
 0x465   :  { %v389_v6 = vsel %vm2031_vm3, -100000.0, %v385_v5  ;;  %v1710_v7 = vpop.f32.mrb[5].mxu1 }
 0x466   :  { %v1233_v9 = vpop.f32.mrb[10].mxu0  ;;  %v390_v10 = vsel %vm147_vm2, %v389_v6, -inf }
 0x467   :  { %v1760_v14 = vpop.f32.mrb[11].mxu0  ;;  %391 = vmax.xlane.f32.xlu1 %v390_v10  ;;  %v1237_v17 = vsel %vm2031_vm3, -100000.0, %v1233_v9 }
 0x468   :  { %v1238_v22 = vsel %vm147_vm2, %v1237_v17, -inf }
 0x46a   :  { %v1399_v15 = vpop.f32.mrb[12].mxu0 }
 0x46b   :  { %v1403_v18 = vsel %vm2031_vm3, -100000.0, %v1399_v15  ;;  %v1770_v19 = vpop.f32.mrb[13].mxu0  ;;  %907 = vmax.xlane.f32.xlu1 %v906_v16 }
 0x46c   :  { %v1404_v20 = vsel %vm147_vm2, %v1403_v18, -inf  ;;  %v45_v19 = vld [vmem:[#allocation5 + $0x28] sm:$0xff] }
 0x46d   :  { %1405 = vmax.xlane.f32.xlu0 %v1404_v20  ;;  %v46_v20 = vld [vmem:[#allocation5 + $0x30] sm:$0xff] }
 0x46f   :  { %1239 = vmax.xlane.f32.xlu1 %v1238_v22  ;;  %v1795_v22 = vpack.c.bf16 %v46_v20, %v45_v19 }
 0x471   :  { %563 = vadd.xlane.f32.xlu0 %v562_v25  ;;  %1796 = vmatprep.subr.bf16.mxu0 %v1795_v22  ;;  %v47_v25 = vld [vmem:[#allocation5 + $0x38] sm:$0xff] }
 0x472   :  { %1798 = vmatpush3.bf16.msra.mxu0 %v1795_v22 }
 0x473   :  { %729 = vadd.xlane.f32.xlu1 %v728_v24  ;;  %v48_v24 = vld [vmem:[#allocation5 + $0x40] sm:$0xff] }
 0x4ef   :  { %v1074_v26 = vpop.xlane.xlu0 %1073 }
 0x4f0   :  { %v1075_v27 = vsub.f32 %v1071_v63, %v1074_v26  ;;  %v1799_v26 = vpack.c.bf16 %v48_v24, %v47_v25 }
 0x4f2   :  { %v1076_v28 = vmul.f32 1.442695, %v1075_v27  ;;  %1800 = vmatprep.subr.bf16.mxu0 %v1799_v26 }
 0x4f3   :  { %1802 = vmatpush3.bf16.msra.mxu0 %v1799_v26 }
 0x4f4   :  { %1831 = vpow2.f32 %v1076_v28  ;;  %v392_v29 = vpop.xlane.xlu1 %391 }
 0x4f5   :  { %v393_v47 = vsub.f32 %v389_v6, %v392_v29 }
 0x4f7   :  { %v394_v48 = vmul.f32 1.442695, %v393_v47 }
 0x4f8   :  { %v908_v30 = vpop.xlane.xlu1 %907 }
 0x4f9   :  { %v909_v31 = vsub.f32 %v905_v12, %v908_v30 }
 0x4fa   :  { %v1406_v32 = vpop.xlane.xlu0 %1405 }
 0x4fb   :  { %v910_v33 = vmul.f32 1.442695, %v909_v31  ;;  %v1407_v34 = vsub.f32 %v1403_v18, %v1406_v32 }
 0x4fc   :  { %v1240_v35 = vpop.xlane.xlu1 %1239 }
 0x4fd   :  { %1833 = vpow2.f32 %v910_v33  ;;  %v1408_v36 = vmul.f32 1.442695, %v1407_v34  ;;  %v1241_v37 = vsub.f32 %v1237_v17, %v1240_v35 }
 0x4fe   :  { %v2118_v38 = vpop.eup %1831  ;;  %v564_v51 = vpop.xlane.xlu0 %563 }
 0x4ff   :  { %1835 = vpow2.f32 %v1408_v36  ;;  %v1242_v39 = vmul.f32 1.442695, %v1241_v37  ;;  %v1078_v40 = vsel %vm147_vm2, %v2118_v38, 0.0 }
 0x500   :  { %1079 = vadd.xlane.f32.xlu1 %v1078_v40  ;;  %v730_v55 = vpop.xlane.xlu1 %729 }
 0x501   :  { %1837 = vpow2.f32 %v1242_v39 }
 0x502   :  { %1839 = vpow2.f32 %v394_v48  ;;  %v1638_v48 = vld [vmem:[#allocation5 + $0x48] ss:$0 sm:$0xff] }
 0x507   :  { %v2122_v41 = vpop.eup %1833 }
 0x508   :  { %v912_v42 = vsel %vm147_vm2, %v2122_v41, 0.0 }
 0x509   :  { %v2126_v43 = vpop.eup %1835  ;;  %913 = vadd.xlane.f32.xlu0 %v912_v42 }
 0x50a   :  { %v1410_v44 = vsel %vm147_vm2, %v2126_v43, 0.0 }
 0x50b   :  { %v2130_v45 = vpop.eup %1837  ;;  %1411 = vadd.xlane.f32.xlu1 %v1410_v44 }
 0x50c   :  { %v1244_v46 = vsel %vm147_vm2, %v2130_v45, 0.0  ;;  %v1840_v49 = vpop.eup %1839 }
 0x50d   :  { %1245 = vadd.xlane.f32.xlu0 %v1244_v46  ;;  %v396_v50 = vsel %vm147_vm2, %v1840_v49, 0.0 }
 0x51c   :  { %567 = vrot.lane.b32.xlu1 %v2002_v13, %s1941_s13 }
 0x523   :  { %401 = vrot.lane.b32.xlu0 %v2002_v13, %s1942_s14 }
 0x527   :  { %917 = vrot.lane.b32.xlu0 %v2000_v11, %s1933_s1 }
 0x52b   :  { %1249 = vrot.lane.b32.xlu0 %v2000_v11, %s1941_s13 }
 0x540   :  { %397 = vadd.xlane.f32.xlu1 %v396_v50 }
 0x551   :  { %733 = vrot.lane.b32.xlu1 %v2002_v13, %s1943_s15 }
 0x555   :  { %1083 = vrot.lane.b32.xlu1 %v2000_v11, %s1942_s14 }
 0x559   :  { %1415 = vrot.lane.b32.xlu1 %v2000_v11, %s1943_s15 }
 0x58d   :  { %v1080_v56 = vpop.xlane.xlu1 %1079 }
 0x596   :  { %v914_v52 = vpop.xlane.xlu0 %913 }
 0x598   :  { %v1412_v57 = vpop.xlane.xlu1 %1411 }
 0x59a   :  { %v1246_v53 = vpop.xlane.xlu0 %1245 }
 0x59c   :  { %v568_v58 = vpop.permute.xlu1 %567 }
 0x59e   :  { %v402_v54 = vpop.permute.xlu0 %401 }
 0x59f   :  { %1712 = vmatpush3.msra.mxu1 %v402_v54 }
 0x5a0   :  { %1721 = vmatprep.subr.mxu1 %v1931_v8 }
 0x5a2   :  { %v918_v3 = vpop.permute.xlu0 %917 }
 0x5a6   :  { %v1250_v10 = vpop.permute.xlu0 %1249 }
 0x5cd   :  { %v398_v59 = vpop.xlane.xlu1 %397 }
 0x5ce   :  { %1841 = vrcp.f32 %v398_v59 }
 0x5cf   :  { %1843 = vrcp.f32 %v564_v51 }
 0x5d0   :  { %1845 = vrcp.f32 %v730_v55 }
 0x5d1   :  { %1847 = vrcp.f32 %v914_v52  ;;  %v734_v63 = vpop.permute.xlu1 %733 }
 0x5d2   :  { %1849 = vrcp.f32 %v1080_v56 }
 0x5d3   :  { %1851 = vrcp.f32 %v1246_v53 }
 0x5d4   :  { %1853 = vrcp.f32 %v1412_v57 }
 0x5d5   :  { %v1084_v6 = vpop.permute.xlu1 %1083 }
 0x5d8   :  { %v1842_v13 = vpop.eup %1841 }
 0x5d9   :  { %v400_v60 = vmul.f32 %v1842_v13, %v1840_v49  ;;  %v1844_v61 = vpop.eup %1843  ;;  %v1416_v15 = vpop.permute.xlu1 %1415 }
 0x5da   :  { %v566_v11 = vmul.f32 %v1844_v61, %v2109_v21  ;;  %v1846_v62 = vpop.eup %1845 }
 0x5db   :  { %1714 = vmatmul.mubr.msk.f32.vlgmr.msra.gmra.mrb[6].mxu1 %vm147_vm2, %v400_v60  ;;  %v732_v1 = vmul.f32 %v1846_v62, %v2112_v23  ;;  %v1848_v2 = vpop.eup %1847 }
 0x5dc   :  { %1722 = vmatpush3.msra.mxu1 %v568_v58  ;;  %1723 = vmatprep.mubr.msk.f32.mxu1 %vm1932_vm1, %v1931_v8  ;;  %v916_v4 = vmul.f32 %v1848_v2, %v2122_v41  ;;  %v1850_v5 = vpop.eup %1849 }
 0x5dd   :  { %1731 = vmatprep.subr.mxu1 %v1931_v8  ;;  %v1082_v7 = vmul.f32 %v1850_v5, %v2118_v38  ;;  %v1852_v9 = vpop.eup %1851 }
 0x5de   :  { %v1248_v12 = vmul.f32 %v1852_v9, %v2130_v45  ;;  %v1854_v14 = vpop.eup %1853 }
 0x5df   :  { %1724 = vmatmul.mubr.msk.f32.vlgmr.msra.gmra.mrb[8].mxu1 %vm147_vm2, %v566_v11  ;;  %v1414_v16 = vmul.f32 %v1854_v14, %v2126_v43 }
 0x5e0   :  { %1732 = vmatpush3.msra.mxu1 %v734_v63  ;;  %1733 = vmatprep.mubr.msk.f32.mxu1 %vm1932_vm1, %v1931_v8 }
 0x5e1   :  { %1741 = vmatprep.subr.mxu1 %v1931_v8 }
 0x5e3   :  { %1734 = vmatmul.mubr.msk.f32.vlgmr.msra.gmra.mrb[10].mxu1 %vm147_vm2, %v732_v1 }
 0x5e4   :  { %1742 = vmatpush3.msra.mxu1 %v918_v3  ;;  %1743 = vmatprep.mubr.msk.f32.mxu1 %vm1932_vm1, %v1931_v8 }
 0x5e5   :  { %1751 = vmatprep.subr.mxu1 %v1931_v8 }
 0x5e7   :  { %1744 = vmatmul.mubr.msk.f32.vlgmr.msra.gmra.mrb[12].mxu1 %vm147_vm2, %v916_v4 }
 0x5e8   :  { %1752 = vmatpush3.msra.mxu1 %v1084_v6  ;;  %1753 = vmatprep.mubr.msk.f32.mxu1 %vm1932_vm1, %v1931_v8 }
 0x5e9   :  { %1761 = vmatprep.subr.mxu1 %v1931_v8 }
 0x5eb   :  { %1754 = vmatmul.mubr.msk.f32.vlgmr.msra.gmra.mrb[14].mxu1 %vm147_vm2, %v1082_v7 }
 0x5ec   :  { %1762 = vmatpush3.msra.mxu1 %v1250_v10  ;;  %1763 = vmatprep.mubr.msk.f32.mxu1 %vm1932_vm1, %v1931_v8 }
 0x5ed   :  { %1771 = vmatprep.subr.mxu1 %v1931_v8 }
 0x5ef   :  { %1764 = vmatmul.mubr.msk.f32.vlgmr.msra.gmra.mrb[16].mxu1 %vm147_vm2, %v1248_v12 }
 0x5f0   :  { %1772 = vmatpush3.msra.mxu1 %v1416_v15  ;;  %1773 = vmatprep.mubr.msk.f32.mxu1 %vm1932_vm1, %v1931_v8 }
 0x5f3   :  { %1774 = vmatmul.mubr.msk.f32.vlgmr.msra.gmra.mrb[18].mxu1 %vm147_vm2, %v1414_v16 }
 0x6ae   :  { %v473_v17 = vpop.f32.mrb[6].mxu1 }
 0x6af   :  { %810 = vrot.lane.b32.xlu0 %v473_v17, %s1929_s20  ;;  %v1715_v18 = vpop.f32.mrb[7].mxu1 }
 0x6b2   :  { %v639_v21 = vpop.f32.mrb[8].mxu1 }
 0x6b3   :  { %814 = vrot.lane.b32.xlu1 %v639_v21, %s1944_s16  ;;  %v1725_v23 = vpop.f32.mrb[9].mxu1 }
 0x6b6   :  { %v805_v8 = vpop.f32.mrb[10].mxu1 }
 0x6b7   :  { %818 = vrot.lane.b32.xlu1 %v805_v8, %s1945_s17  ;;  %v1735_v27 = vpop.f32.mrb[11].mxu1 }
 0x6ba   :  { %v989_v28 = vpop.f32.mrb[12].mxu1 }
 0x6bb   :  { %v1745_v29 = vpop.f32.mrb[13].mxu1 }
 0x6be   :  { %v1155_v30 = vpop.f32.mrb[14].mxu1 }
 0x6bf   :  { %1492 = vrot.lane.b32.xlu0 %v1155_v30, %s1929_s20  ;;  %v1755_v31 = vpop.f32.mrb[15].mxu1 }
 0x6c2   :  { %v1321_v32 = vpop.f32.mrb[16].mxu1 }
 0x6c3   :  { %1496 = vrot.lane.b32.xlu0 %v1321_v32, %s1944_s16  ;;  %v1765_v33 = vpop.f32.mrb[17].mxu1 }
 0x6c6   :  { %v1487_v34 = vpop.f32.mrb[18].mxu1 }
 0x6c7   :  { %1500 = vrot.lane.b32.xlu1 %v1487_v34, %s1945_s17  ;;  %v1775_v35 = vpop.f32.mrb[19].mxu1 }
 0x721   :  { %v811_v36 = vpop.permute.xlu0 %810 }
 0x722   :  { %v821_v38 = vsel %vm147_vm2, %v2095_v0, %v811_v36 }
 0x725   :  { %v815_v37 = vpop.permute.xlu1 %814 }
 0x726   :  { %v823_v39 = vsel %vm822_vm4, %v821_v38, %v815_v37 }
 0x729   :  { %v819_v40 = vpop.permute.xlu1 %818 }
 0x72a   :  { %v825_v41 = vsel %vm824_vm5, %v823_v39, %v819_v40 }
 0x72b   :  { %1784 = vmatprep.mubr.msk.f32.mxu0 %vm56_vm0, %v825_v41 }
 0x731   :  { %v1493_v42 = vpop.permute.xlu0 %1492 }
 0x732   :  { %v1503_v44 = vsel %vm147_vm2, %v989_v28, %v1493_v42 }
 0x735   :  { %v1497_v43 = vpop.permute.xlu0 %1496 }
 0x736   :  { %v1504_v45 = vsel %vm822_vm4, %v1503_v44, %v1497_v43 }
 0x739   :  { %v1501_v46 = vpop.permute.xlu1 %1500 }
 0x73a   :  { %v1505_v47 = vsel %vm824_vm5, %v1504_v45, %v1501_v46 }
 0x73b   :  { %1785 = vmatmul.mubr.msk.f32.vlgmr.msra.gmra.mrb[14].mxu0 %vm56_vm0, %v1505_v47 }
 0x80e   :  { %v1786_v49 = vpop.f32.mrb[14].mxu0 }
 0x80f   :  { %v1588_v50 = vadd.f32 %v1786_v49, %v1638_v48  ;;  %v1582_v0 = vpop.f32.mrb[15].mxu0 }
 0x810   :  { %v1583_v51 = vadd.f32 %v1638_v48, %v1582_v0 }
 0x811   :  { %1592 = vst.msk [vmem:[#allocation7 + $0x8] sm:$0xff] %vm56_vm0, %v1588_v50 }
 0x812   :  { %1591 = vst.msk [vmem:[#allocation7] sm:$0xff] %vm56_vm0, %v1583_v51 }
 0x813   :  { %1910 = shalt.err (!%p1907_p6)
}
 0x814   :  { %s1911_s25 = scalar_lea.hbm %s2200_s2, 256 }
 0x815   :  { %p1912_p7 = scmp.ne.s32.totalorder %s2200_s2, %s1911_s25  ;;  %p1915_p8 = scmp.lt.u32.totalorder %s1911_s25, %s2200_s2 }
 0x817   :  { %p1917_p9 = pnand %p1915_p8, %p1912_p7 }
 0x819   :  { %1920 = shalt.err (!%p1917_p9)
}
 0x81a   :  { %1604 = dma.vmem_to_hbm [thread:$0]  %s1599_s21, 256, %s2200_s2, [#allocation4], %s1928_s19, %s1928_s19, %s1929_s20  }
 0x81b   :  { %1925 = dma.done.wait [#allocation4], 256  }
 0x81c   :  { %1926 = vsyncadd [#allocation4], 4294967040 }
 0x81d   :  { %1608 = vsyncpa [#allocation3], 1 }
 0x81e   :  { %1609 = vsyncpa [#allocation6], 1 }
 0x81f   :  { %1610 = vsyncpa [#allocation4], 1 }

</bundles_post_ra>
